<compile_context>
chip_gen: v7x
topology: tpu7x:2x2x1
jax: 0.10.0
libtpu: 0.0.40
codegen_flags: <defaults>
</compile_context>

<pallas_src>
import functools

import jax
import jax.numpy as jnp
from jax.experimental import pallas as pl
from jax.experimental.pallas import tpu as pltpu


def _softsign(h, approx):
    d = 1.0 + jnp.abs(h)
    if approx:
        # EUP reciprocal + VALU mul: frees VALU slots (binding on v7x at large tiles).
        return h * pl.reciprocal(d, approx=True)
    # Exact f32 divide: bit-faithful to F.softsign up to rounding.
    return h / d


def sw_abs_kernel(x_ref, w1_ref, b1_ref, w2_ref, b2_ref, w3_ref, b3_ref, o_ref,
                  *, approx_softsign):
    # Whole MLP hot path for one batch tile; all math in f32, cast only at the store.
    x = x_ref[...].astype(jnp.float32)

    h = jnp.dot(x, w1_ref[...], preferred_element_type=jnp.float32) + b1_ref[...]
    h = _softsign(h, approx_softsign)

    h = jnp.dot(h, w2_ref[...], preferred_element_type=jnp.float32) + b2_ref[...]
    h = _softsign(h, approx_softsign)

    out = jnp.dot(h, w3_ref[...], preferred_element_type=jnp.float32) + b3_ref[...]
    o_ref[...] = out.astype(o_ref.dtype)


def _round_up(n, m):
    return ((n + m - 1) // m) * m


@functools.partial(jax.jit, static_argnames=("batch_tile", "out_dtype", "approx_softsign"))
def sw_abs_forward(x, params, *, batch_tile=4096, out_dtype=jnp.bfloat16,
                   approx_softsign=True):
    """Forward pass of SW_abs.

    x: (B, input_size) float32.
    params: dict with w{1,2,3} of shape (in, out) and b{1,2,3} of shape (1, out)
            (w = torch_weight.T, so the kernel computes x @ W + b).
    batch_tile: max rows per grid step (rounded to a multiple of 8).
    out_dtype: output storage dtype.  Default bf16 halves HBM writeback; use jnp.float32
               to match the PyTorch module's output dtype exactly.
    approx_softsign: use the EUP approximate reciprocal inside softsign (default).  Set
               False for an exact f32 divide (use with out_dtype=float32 for strict checks).
    """
    B, in_dim = x.shape
    out_dim = params["w3"].shape[1]

    # --- Batch tile selection -------------------------------------------------------------
    # Multiple of 8 (f32 sublane constraint), capped at the batch, and capped at ~half the
    # batch for mid-sized B so the 1-D "parallel" grid always has >= 2 steps (lets v7x's two
    # TensorCores both get work).  Callers with B a multiple of the tile hit the no-pad,
    # no-slice fast path.
    B8 = _round_up(B, 8)
    tile = min(batch_tile, B8)
    if B8 >= 16:
        tile = min(tile, _round_up((B8 + 1) // 2, 8))
    tile = max(8, (tile // 8) * 8)

    B_pad = _round_up(B, tile)
    if B_pad != B:
        x = jnp.pad(x, ((0, B_pad - B), (0, 0)))
    grid = (B_pad // tile,)

    # Constant index_map -> weights/biases stay resident in VMEM across grid steps.
    resident = lambda arr: pl.BlockSpec(arr.shape, lambda i: (0, 0))

    out = pl.pallas_call(
        functools.partial(sw_abs_kernel, approx_softsign=approx_softsign),
        out_shape=jax.ShapeDtypeStruct((B_pad, out_dim), out_dtype),
        grid_spec=pltpu.PrefetchScalarGridSpec(
            num_scalar_prefetch=0,
            grid=grid,
            in_specs=[
                pl.BlockSpec((tile, in_dim), lambda i: (i, 0)),  # x tile (pipelined)
                resident(params["w1"]),                          # w1 (in, 48)
                resident(params["b1"]),                          # b1 (1, 48)
                resident(params["w2"]),                          # w2 (48, 48)
                resident(params["b2"]),                          # b2 (1, 48)
                resident(params["w3"]),                          # w3 (48, 224) — no column pad
                resident(params["b3"]),                          # b3 (1, 224)
            ],
            # Output block last dim = full 224 (no 224->256 pad, no post-kernel column slice).
            out_specs=pl.BlockSpec((tile, out_dim), lambda i: (i, 0)),
        ),
        compiler_params=pltpu.CompilerParams(
            # Independent batch tiles -> grid steps shard across v7x's 2 TensorCores.
            dimension_semantics=("parallel",),
            # Explicit scoped-VMEM budget: > real ~20 MiB footprint at tile=4096,
            # > v5e's 16 MiB default, < v7x's 64 MiB per-TC physical VMEM.
            vmem_limit_bytes=48 * 1024 * 1024,
        ),
    )(x, params["w1"], params["b1"], params["w2"], params["b2"],
      params["w3"], params["b3"])

    if B_pad != B:
        # TODO(synk): prefer supplying B as a multiple of the tile in the caller; this row
        # slice is an extra (small) HBM copy of the output.
        out = out[:B]
    return out


def init_params(key, input_size):
    """Deterministic init mirroring nn.Linear's U(-1/sqrt(fan_in), 1/sqrt(fan_in))."""
    dims = [(input_size, 48), (48, 48), (48, 224)]
    params = {}
    keys = jax.random.split(key, 2 * len(dims))
    for idx, (fan_in, fan_out) in enumerate(dims):
        bound = 1.0 / jnp.sqrt(jnp.float32(fan_in))
        w = jax.random.uniform(keys[2 * idx], (fan_in, fan_out),
                               minval=-bound, maxval=bound, dtype=jnp.float32)
        b = jax.random.uniform(keys[2 * idx + 1], (1, fan_out),
                               minval=-bound, maxval=bound, dtype=jnp.float32)
        params[f"w{idx + 1}"] = w
        params[f"b{idx + 1}"] = b
    return params


def sw_abs_reference(x, params):
    softsign = lambda v: v / (1.0 + jnp.abs(v))
    h1 = softsign(x @ params["w1"] + params["b1"])
    h2 = softsign(h1 @ params["w2"] + params["b2"])
    return h2 @ params["w3"] + params["b3"]


if __name__ == "__main__":
    input_size = 7  # Temp, Pres, and gaseous concentrations (SW)

    key = jax.random.PRNGKey(0)
    k_x1, k_x2, k_p = jax.random.split(key, 3)
    params = init_params(k_p, input_size)

    # --- Config 1: default / benchmarked path (bf16 output, approx softsign reciprocal).
    # batch is a multiple of the tile -> no padding, no post-kernel slice, 4 grid steps.
    B1 = 256
    x1 = jax.random.normal(k_x1, (B1, input_size), dtype=jnp.float32)
    out1 = jax.block_until_ready(sw_abs_forward(x1, params, batch_tile=64))
    ref1 = sw_abs_reference(x1, params)
    assert out1.shape == (B1, 224), out1.shape
    assert out1.dtype == jnp.bfloat16, out1.dtype
    assert jnp.allclose(out1.astype(jnp.float32), ref1, atol=2.5e-2, rtol=2.5e-2), \
        "bf16/approx path mismatch vs reference"

    # --- Config 2: exact path (f32 output, exact softsign divide); batch NOT a multiple of
    # the tile, exercising the row-padding + slice fallback.
    B2 = 200
    x2 = jax.random.normal(k_x2, (B2, input_size), dtype=jnp.float32)
    out2 = jax.block_until_ready(
        sw_abs_forward(x2, params, batch_tile=64,
                       out_dtype=jnp.float32, approx_softsign=False))
    ref2 = sw_abs_reference(x2, params)
    assert out2.shape == (B2, 224), out2.shape
    assert out2.dtype == jnp.float32, out2.dtype
    assert jnp.allclose(out2, ref2, atol=5e-3, rtol=5e-3), \
        "f32/exact path mismatch vs reference"

    print("KERNEL_OK")
</pallas_src>

<mosaic_0001>
module attributes {stable_mosaic.version = 11 : i64} {
  func.func @sw_abs_kernel(%arg0: i32, %arg1: memref<64x7xf32, #tpu.memory_space<vmem>>, %arg2: memref<7x48xf32, #tpu.memory_space<vmem>>, %arg3: memref<1x48xf32, #tpu.memory_space<vmem>>, %arg4: memref<48x48xf32, #tpu.memory_space<vmem>>, %arg5: memref<1x48xf32, #tpu.memory_space<vmem>>, %arg6: memref<48x224xf32, #tpu.memory_space<vmem>>, %arg7: memref<1x224xf32, #tpu.memory_space<vmem>>, %arg8: memref<64x224xbf16, #tpu.memory_space<vmem>>) attributes {dimension_semantics = [#tpu.dimension_semantics<parallel>], iteration_bounds = array<i64: 4>, scalar_prefetch = 0 : i64, scratch_operands = 0 : i64, tpu.core_type = #tpu.core_type<tc>, window_params = [{transform_indices = @transform_0, window_bounds = array<i64: 64, 7>}, {pipeline_mode = #tpu.pipeline_mode<synchronous>, transform_indices = @transform_1, window_bounds = array<i64: 7, 48>}, {pipeline_mode = #tpu.pipeline_mode<synchronous>, transform_indices = @transform_2, window_bounds = array<i64: 1, 48>}, {pipeline_mode = #tpu.pipeline_mode<synchronous>, transform_indices = @transform_3, window_bounds = array<i64: 48, 48>}, {pipeline_mode = #tpu.pipeline_mode<synchronous>, transform_indices = @transform_4, window_bounds = array<i64: 1, 48>}, {pipeline_mode = #tpu.pipeline_mode<synchronous>, transform_indices = @transform_5, window_bounds = array<i64: 48, 224>}, {pipeline_mode = #tpu.pipeline_mode<synchronous>, transform_indices = @transform_6, window_bounds = array<i64: 1, 224>}, {transform_indices = @transform_7, window_bounds = array<i64: 64, 224>}]} {
    %c0 = arith.constant 0 : index
    %c0_0 = arith.constant 0 : index
    %0 = vector.load %arg1[%c0, %c0_0] : memref<64x7xf32, #tpu.memory_space<vmem>>, vector<64x7xf32>
    %c0_1 = arith.constant 0 : index
    %c0_2 = arith.constant 0 : index
    %1 = vector.load %arg2[%c0_1, %c0_2] : memref<7x48xf32, #tpu.memory_space<vmem>>, vector<7x48xf32>
    %cst = arith.constant dense<0.000000e+00> : vector<64x48xf32>
    %2 = tpu.matmul %0, %1, %cst {dimension_numbers = #tpu.dot_dimension_numbers<[1], [0], [0], [1], [0, 0, 1, 1], [], []>} : vector<64x7xf32>, vector<7x48xf32>, vector<64x48xf32> -> vector<64x48xf32>
    %c0_3 = arith.constant 0 : index
    %c0_4 = arith.constant 0 : index
    %3 = vector.load %arg3[%c0_3, %c0_4] : memref<1x48xf32, #tpu.memory_space<vmem>>, vector<1x48xf32>
    %4 = vector.broadcast %3 : vector<1x48xf32> to vector<64x48xf32>
    %5 = arith.addf %2, %4 : vector<64x48xf32>
    %6 = math.absf %5 : vector<64x48xf32>
    %cst_5 = arith.constant 1.000000e+00 : f32
    %7 = vector.broadcast %cst_5 : f32 to vector<64x48xf32>
    %8 = arith.addf %7, %6 : vector<64x48xf32>
    %9 = tpu.reciprocal %8 {approx = true} : vector<64x48xf32> -> vector<64x48xf32>
    %10 = arith.mulf %5, %9 : vector<64x48xf32>
    %c0_6 = arith.constant 0 : index
    %c0_7 = arith.constant 0 : index
    %11 = vector.load %arg4[%c0_6, %c0_7] : memref<48x48xf32, #tpu.memory_space<vmem>>, vector<48x48xf32>
    %cst_8 = arith.constant dense<0.000000e+00> : vector<64x48xf32>
    %12 = tpu.matmul %10, %11, %cst_8 {dimension_numbers = #tpu.dot_dimension_numbers<[1], [0], [0], [1], [0, 0, 1, 1], [], []>} : vector<64x48xf32>, vector<48x48xf32>, vector<64x48xf32> -> vector<64x48xf32>
    %c0_9 = arith.constant 0 : index
    %c0_10 = arith.constant 0 : index
    %13 = vector.load %arg5[%c0_9, %c0_10] : memref<1x48xf32, #tpu.memory_space<vmem>>, vector<1x48xf32>
    %14 = vector.broadcast %13 : vector<1x48xf32> to vector<64x48xf32>
    %15 = arith.addf %12, %14 : vector<64x48xf32>
    %16 = math.absf %15 : vector<64x48xf32>
    %cst_11 = arith.constant 1.000000e+00 : f32
    %17 = vector.broadcast %cst_11 : f32 to vector<64x48xf32>
    %18 = arith.addf %17, %16 : vector<64x48xf32>
    %19 = tpu.reciprocal %18 {approx = true} : vector<64x48xf32> -> vector<64x48xf32>
    %20 = arith.mulf %15, %19 : vector<64x48xf32>
    %c0_12 = arith.constant 0 : index
    %c0_13 = arith.constant 0 : index
    %21 = vector.load %arg6[%c0_12, %c0_13] : memref<48x224xf32, #tpu.memory_space<vmem>>, vector<48x224xf32>
    %cst_14 = arith.constant dense<0.000000e+00> : vector<64x224xf32>
    %22 = tpu.matmul %20, %21, %cst_14 {dimension_numbers = #tpu.dot_dimension_numbers<[1], [0], [0], [1], [0, 0, 1, 1], [], []>} : vector<64x48xf32>, vector<48x224xf32>, vector<64x224xf32> -> vector<64x224xf32>
    %c0_15 = arith.constant 0 : index
    %c0_16 = arith.constant 0 : index
    %23 = vector.load %arg7[%c0_15, %c0_16] : memref<1x224xf32, #tpu.memory_space<vmem>>, vector<1x224xf32>
    %24 = vector.broadcast %23 : vector<1x224xf32> to vector<64x224xf32>
    %25 = arith.addf %22, %24 : vector<64x224xf32>
    %26 = arith.truncf %25 : vector<64x224xf32> to vector<64x224xbf16>
    %c0_17 = arith.constant 0 : index
    %c0_18 = arith.constant 0 : index
    %27 = vector.load %arg8[%c0_17, %c0_18] : memref<64x224xbf16, #tpu.memory_space<vmem>>, vector<64x224xbf16>
    tpu.vector_store %arg8[%c0_17, %c0_18], %26 {strides = array<i32>} : memref<64x224xbf16, #tpu.memory_space<vmem>>, vector<64x224xbf16>,
    return
  }
  func.func @transform_0(%arg0: i32) -> (i32, i32) {
    %c0_i32 = arith.constant 0 : i32
    %c0_i32_0 = arith.constant 0 : i32
    return %arg0, %c0_i32 : i32, i32
  }
  func.func @transform_1(%arg0: i32) -> (i32, i32) {
    %c0_i32 = arith.constant 0 : i32
    %c0_i32_0 = arith.constant 0 : i32
    %c0_i32_1 = arith.constant 0 : i32
    return %c0_i32, %c0_i32_0 : i32, i32
  }
  func.func @transform_2(%arg0: i32) -> (i32, i32) {
    %c0_i32 = arith.constant 0 : i32
    %c0_i32_0 = arith.constant 0 : i32
    %c0_i32_1 = arith.constant 0 : i32
    return %c0_i32, %c0_i32_0 : i32, i32
  }
  func.func @transform_3(%arg0: i32) -> (i32, i32) {
    %c0_i32 = arith.constant 0 : i32
    %c0_i32_0 = arith.constant 0 : i32
    %c0_i32_1 = arith.constant 0 : i32
    return %c0_i32, %c0_i32_0 : i32, i32
  }
  func.func @transform_4(%arg0: i32) -> (i32, i32) {
    %c0_i32 = arith.constant 0 : i32
    %c0_i32_0 = arith.constant 0 : i32
    %c0_i32_1 = arith.constant 0 : i32
    return %c0_i32, %c0_i32_0 : i32, i32
  }
  func.func @transform_5(%arg0: i32) -> (i32, i32) {
    %c0_i32 = arith.constant 0 : i32
    %c0_i32_0 = arith.constant 0 : i32
    %c0_i32_1 = arith.constant 0 : i32
    return %c0_i32, %c0_i32_0 : i32, i32
  }
  func.func @transform_6(%arg0: i32) -> (i32, i32) {
    %c0_i32 = arith.constant 0 : i32
    %c0_i32_0 = arith.constant 0 : i32
    %c0_i32_1 = arith.constant 0 : i32
    return %c0_i32, %c0_i32_0 : i32, i32
  }
  func.func @transform_7(%arg0: i32) -> (i32, i32) {
    %c0_i32 = arith.constant 0 : i32
    %c0_i32_0 = arith.constant 0 : i32
    return %arg0, %c0_i32 : i32, i32
  }
}

</mosaic_0001>

<bundles_post_ra>
// kernel: sw_abs_forward.1
= control target key start
LH: loop header
LB: loop body
LE: loop exit
PB: predicated region body
PF: predicated region fallthrough
CT: control target
= control target key end

     0   :  { %s1158_s24 = smov 0   ;;  %s1310_s0 = inlined_call_operand.vmem [shape: f32[256,7], index: 0, kind: input, shape index: {}]   ;;  %s1311_s1 = inlined_call_operand.vmem [shape: f32[7,48], index: 1, kind: input, shape index: {}]   ;;  %s1312_s2 = inlined_call_operand.vmem [shape: f32[1,48], index: 2, kind: input, shape index: {}]   ;;  %s1313_s3 = inlined_call_operand.vmem [shape: f32[48,48], index: 3, kind: input, shape index: {}]   ;;  %s1314_s4 = inlined_call_operand.vmem [shape: f32[1,48], index: 4, kind: input, shape index: {}]   ;;  %s1315_s5 = inlined_call_operand.vmem [shape: f32[48,224], index: 5, kind: input, shape index: {}]   ;;  %s1316_s6 = inlined_call_operand.vmem [shape: f32[1,224], index: 6, kind: input, shape index: {}]   ;;  %s1317_s7 = inlined_call_operand.vmem [shape: bf16[256,224], index: 7, kind: output, shape index: {}]  }
   0x1 LB: > { %s919_s25 = sadd.s32 4294967295, %s1115_s24   ;;  %p923_p0 = scmp.ge.s32.totalorder %s1115_s24, 1  ;;  %s1115_s24 = sphi %s1158_s24, %s17_s24  }
   0x2   : > { %p238_p1 = scmp.lt.s32.totalorder %s1115_s24, 5 }
   0x4   : > { %p239_p2 = pnand %p923_p0, %p238_p1 }
   0x5   : > { %v292_v0 = vld [vmem:[%s1311_s1] sm:$0x7f] (!%p239_p2)  ;;  %vm325_vm0 = vcmask (!%p239_p2), 1046528   ;;  %s924_s28 = sshll.u32 (!%p239_p2), %s919_s25, 3  ;;  %vm300_vm1 = vcmask (!%p239_p2), 56320   ;;  %v467_v10 = vld [vmem:[%s1313_s3 + $0x8] sm:$0xff] (!%p239_p2) }
   0x6   : > { %242 = sbr.rel (%p239_p2) target bundleno = 721 (0x2d1), region = 48  ;;  %998 = vmatprep.subr.msk.mxu0 (!%p239_p2), %vm325_vm0, %v292_v0  ;;  %1060 = vmatprep.subr.msk.mxu1 (!%p239_p2), %vm325_vm0, %v292_v0  ;;  %p272_p3 = scmp.lt.s32.totalorder (!%p239_p2), %s924_s28, 31  ;;  %v466_v9 = vld [vmem:[%s1313_s3] sm:$0xff] (!%p239_p2)  ;;  %v468_v12 = vld [vmem:[%s1313_s3 + $0x10] sm:$0xff] (!%p239_p2)  ;;  %v469_v13 = vld [vmem:[%s1313_s3 + $0x18] sm:$0xff] (!%p239_p2)  ;;  %vm479_vm2 = vcmask (!%p239_p2), 392192  }
   0x7   : > { %999 = vmatpush3.msk.msra.mxu0 (!%p239_p2), %vm325_vm0, %v292_v0  ;;  %1061 = vmatpush3.msk.msra.mxu1 (!%p239_p2), %vm325_vm0, %v292_v0  ;;  %v1036_v11 = vpack.c.bf16 (!%p239_p2), %v467_v10, %v466_v9  ;;  %v1040_v14 = vpack.c.bf16 (!%p239_p2), %v469_v13, %v468_v12  ;;  %v470_v15 = vld [vmem:[%s1313_s3 + $0x20] sm:$0xff] (!%p239_p2)  ;;  %v471_v16 = vld [vmem:[%s1313_s3 + $0x28] sm:$0xff] (!%p239_p2)  ;;  %v648_v10 = vld [vmem:[%s1315_s5 + $0x38] sm:$0xff] (!%p239_p2)  ;;  %vm850_vm3 = vcmask (!%p239_p2), 1043456   ;;  %vm851_vm4 = vcmask (!%p239_p2), 785412  }
   0x8   : > { %v1044_v17 = vpack.c.bf16 (!%p239_p2), %v471_v16, %v470_v15  ;;  %v929_v18 = vld [vmem:[%s1312_s2] ss:$0 sm:$0xff] (!%p239_p2)  ;;  %v646_v9 = vld [vmem:[%s1315_s5 + $0x28] sm:$0xff] (!%p239_p2)  ;;  %v647_v13 = vld [vmem:[%s1315_s5 + $0x30] sm:$0xff] (!%p239_p2) }
   0x9   : > { %1037 = vmatprep.subr.bf16.mxu1 (!%p239_p2), %v1036_v11  ;;  %v645_v12 = vld [vmem:[%s1315_s5 + $0x20] sm:$0xff] (!%p239_p2)  ;;  %v650_v15 = vld [vmem:[%s1315_s5 + $0x48] sm:$0xff] (!%p239_p2)  ;;  %v652_v16 = vld [vmem:[%s1315_s5 + $0x58] sm:$0xff] (!%p239_p2) }
   0xa   : > { %vm1279_vm5 = vmor (!%p239_p2), %vm851_vm4, %vm850_vm3 }
   0xd   : > { %s1321_s28 = smov (!%p272_p3, %s924_s28), 31 }
   0xe   : > { %s925_s29 = sshll.u32 %s1321_s28, 3 }
   0xf   : > { %s275_s9 = scalar_lea.vmem %s1310_s0, %s925_s29  ;;  %s1277_s14 = scalar_lea.vmem %s1317_s7, %s925_s29 }
  0x10   : > { %v284_v1 = vld [vmem:[%s275_s9] sm:$0xff]  ;;  %v290_v2 = vld [vmem:[%s275_s9 + $0x30] sm:$0xff]  ;;  %v285_v3 = vld [vmem:[%s275_s9 + $0x8] sm:$0xff] }
  0x11   : > { %1000 = vmatprep.mubr.msk.f32.mxu0 %vm300_vm1, %v284_v1  ;;  %1009 = vmatprep.mubr.msk.f32.mxu1 %vm300_vm1, %v290_v2  ;;  %v291_v4 = vld [vmem:[%s275_s9 + $0x38] sm:$0xff]  ;;  %v286_v5 = vld [vmem:[%s275_s9 + $0x10] sm:$0xff]  ;;  %v288_v7 = vld [vmem:[%s275_s9 + $0x20] sm:$0xff] }
  0x12   : > { %1001 = vmatmul.mubr.msk.f32.vlgmr.msra.gmra.mrb[0].mxu0 %vm300_vm1, %v285_v3  ;;  %1010 = vmatmul.mubr.msk.f32.vlgmr.msra.gmra.mrb[0].mxu1 %vm300_vm1, %v291_v4  ;;  %v287_v6 = vld [vmem:[%s275_s9 + $0x18] sm:$0xff]  ;;  %v289_v8 = vld [vmem:[%s275_s9 + $0x28] sm:$0xff] }
  0x13   : > { %1003 = vmatprep.mubr.msk.f32.mxu0 %vm300_vm1, %v286_v5  ;;  %1039 = vmatpush3.bf16.msra.mxu1 %v1036_v11  ;;  %v642_v3 = vld [vmem:[%s1315_s5 + $0x8] sm:$0xff]  ;;  %v644_v4 = vld [vmem:[%s1315_s5 + $0x18] sm:$0xff]  ;;  %v1052_v11 = vpack.c.bf16 %v648_v10, %v646_v9  ;;  %v653_v10 = vld [vmem:[%s1316_s6] sm:$0x3] }
  0x14   : > { %1041 = vmatprep.subr.bf16.mxu1 %v1040_v14  ;;  %v1048_v5 = vpack.c.bf16 %v644_v4, %v642_v3 }
  0x16   : > { %1004 = vmatmul.mubr.msk.f32.gmra.mrb[2].mxu0 %vm300_vm1, %v287_v6  ;;  %v641_v6 = vld [vmem:[%s1315_s5] sm:$0xff]  ;;  %1049 = vmatprep.subr.bf16.mxu0 %v1048_v5 }
  0x17   : > { %1006 = vmatprep.mubr.msk.f32.mxu0 %vm300_vm1, %v288_v7  ;;  %1043 = vmatpush3.bf16.msra.mxu1 %v1040_v14  ;;  %v643_v7 = vld [vmem:[%s1315_s5 + $0x10] sm:$0xff]  ;;  %v1054_v14 = vpack.c.bf16 %v647_v13, %v645_v12 }
  0x18   : > { %1045 = vmatprep.subr.bf16.mxu1 %v1044_v17 }
  0x1a   : > { %1007 = vmatmul.mubr.msk.f32.gmra.mrb[4].mxu0 %vm300_vm1, %v289_v8  ;;  %v1050_v8 = vpack.c.bf16 %v643_v7, %v641_v6  ;;  %v655_v7 = vlaneseq }
  0x1b   : > { %1047 = vmatpush3.bf16.msra.mxu1 %v1044_v17  ;;  %v1056_v17 = vpack.c.bf16 %v652_v16, %v650_v15 }
  0x1c   : > { %1062 = vmatprep.subr.bf16.mxu1 %v1048_v5  ;;  %1051 = vmatpush1.bf16.msra.mxu0 %v1050_v8 }
  0x1d   : > { %1053 = vmatprep.subr.bf16.mxu0 %v1052_v11 }
  0x20   : > { %1055 = vmatpush1.bf16.msra.mxu0 %v1054_v14 }
  0x21   : > { %1057 = vmatprep.subr.bf16.mxu0 %v1056_v17 }
  0xe5   : > { %v1002_v19 = vpop.f32.mrb[0].mxu0  ;;  %v1011_v20 = vpop.f32.mrb[0].mxu1 }
  0xe6   : > { %v401_v21 = vadd.f32 %v1002_v19, %v929_v18  ;;  %v395_v22 = vpop.f32.mrb[1].mxu0  ;;  %v425_v23 = vpop.f32.mrb[1].mxu1  ;;  %v431_v35 = vadd.f32 %v1011_v20, %v929_v18  ;;  %v651_v19 = vld [vmem:[%s1315_s5 + $0x50] sm:$0xff] }
  0xe7   : > { %v396_v24 = vadd.f32 %v929_v18, %v395_v22  ;;  %v426_v29 = vadd.f32 %v929_v18, %v425_v23  ;;  %v939_v22 = vld [vmem:[%s1314_s4] ss:$0 sm:$0xff] }
  0xe8   : > { %v435_v25 = vand.u32 2147483647, %v401_v21  ;;  %v441_v45 = vand.u32 2147483647, %v431_v35 }
  0xe9   : > { %v434_v26 = vand.u32 2147483647, %v396_v24  ;;  %v1005_v27 = vpop.f32.mrb[2].mxu0  ;;  %v440_v38 = vand.u32 2147483647, %v426_v29 }
  0xea   : > { %v443_v28 = vadd.f32 1.0, %v435_v25  ;;  %v411_v30 = vadd.f32 %v1005_v27, %v929_v18  ;;  %v405_v31 = vpop.f32.mrb[3].mxu0  ;;  %v449_v50 = vadd.f32 1.0, %v441_v45 }
  0xeb   : > { %v442_v32 = vadd.f32 1.0, %v434_v26  ;;  %v406_v33 = vadd.f32 %v929_v18, %v405_v31  ;;  %v448_v47 = vadd.f32 1.0, %v440_v38 }
  0xec   : > { %v437_v34 = vand.u32 2147483647, %v411_v30  ;;  %1077 = vrcp.f32 %v443_v28 }
  0xed   : > { %v436_v36 = vand.u32 2147483647, %v406_v33  ;;  %v1008_v37 = vpop.f32.mrb[4].mxu0  ;;  %1079 = vrcp.f32 %v442_v32 }
  0xee   : > { %v445_v39 = vadd.f32 1.0, %v437_v34  ;;  %v421_v40 = vadd.f32 %v1008_v37, %v929_v18  ;;  %v415_v41 = vpop.f32.mrb[5].mxu0 }
  0xef   : > { %v444_v42 = vadd.f32 1.0, %v436_v36  ;;  %v416_v43 = vadd.f32 %v929_v18, %v415_v41  ;;  %v649_v18 = vld [vmem:[%s1315_s5 + $0x40] sm:$0xff] }
  0xf0   : > { %1081 = vrcp.f32 %v445_v39  ;;  %v439_v44 = vand.u32 2147483647, %v421_v40  ;;  %v1058_v20 = vpack.c.bf16 %v651_v19, %v649_v18 }
  0xf1   : > { %1083 = vrcp.f32 %v444_v42  ;;  %v438_v46 = vand.u32 2147483647, %v416_v43 }
  0xf2   : > { %v447_v48 = vadd.f32 1.0, %v439_v44  ;;  %1059 = vmatpush1.bf16.msra.mxu0 %v1058_v20 }
  0xf3   : > { %v446_v49 = vadd.f32 1.0, %v438_v46 }
  0xf4   : > { %1085 = vrcp.f32 %v447_v48 }
  0xf5   : > { %1087 = vrcp.f32 %v446_v49 }
  0xf6   : > { %1089 = vrcp.f32 %v448_v47  ;;  %v1078_v51 = vpop.eup %1077 }
  0xf7   : > { %v1080_v52 = vpop.eup %1079  ;;  %1091 = vrcp.f32 %v449_v50  ;;  %v459_v55 = vmul.f32 %v1078_v51, %v401_v21  ;;  %v1117_v21 = vmov 0.0  }
  0xf8   : > { %v458_v53 = vmul.f32 %v1080_v52, %v396_v24  ;;  %753 = vmatprep.mubr.f32.mxu0 %v1117_v21 }
  0xfa   : > { %v1082_v54 = vpop.eup %1081  ;;  %1024 = vmatprep.mubr.msk.f32.mxu1 %vm479_vm2, %v458_v53 }
  0xfb   : > { %v1084_v56 = vpop.eup %1083  ;;  %1025 = vmatmul.mubr.msk.f32.vlgmr.msra.gmra.mrb[2].mxu1 %vm479_vm2, %v459_v55  ;;  %v461_v59 = vmul.f32 %v1082_v54, %v411_v30 }
  0xfc   : > { %v460_v57 = vmul.f32 %v1084_v56, %v406_v33  ;;  %1065 = vmatpush1.bf16.msra.mxu1 %v1050_v8  ;;  %v656_v8 = vshrl.u32 %v655_v7, 7 }
  0xfd   : > { %1063 = vmatprep.subr.bf16.mxu1 %v1052_v11 }
  0xfe   : > { %v1086_v58 = vpop.eup %1085  ;;  %1027 = vmatprep.mubr.msk.f32.mxu1 %vm479_vm2, %v460_v57  ;;  %v657_v9 = vsub.s32 0, %v656_v8  ;;  %v661_v11 = vsub.s32 1, %v656_v8 }
  0xff   : > { %v1088_v60 = vpop.eup %1087  ;;  %1028 = vmatmul.mubr.msk.f32.gmra.mrb[4].mxu1 %vm479_vm2, %v461_v59  ;;  %v463_v63 = vmul.f32 %v1086_v58, %v421_v40 }
 0x100   : > { %v1090_v61 = vpop.eup %1089  ;;  %v462_v62 = vmul.f32 %v1088_v60, %v416_v43  ;;  %1066 = vmatpush1.bf16.msra.mxu1 %v1054_v14  ;;  %v658_v12 = vrot.slane %v653_v10, %v657_v9  ;;  %v662_v13 = vrot.slane %v653_v10, %v661_v11 }
 0x101   : > { %v1092_v0 = vpop.eup %1091  ;;  %v464_v1 = vmul.f32 %v1090_v61, %v426_v29  ;;  %1064 = vmatprep.subr.bf16.mxu1 %v1056_v17 }
 0x102   : > { %1030 = vmatprep.mubr.msk.f32.mxu1 %vm479_vm2, %v462_v62  ;;  %v465_v2 = vmul.f32 %v1092_v0, %v431_v35 }
 0x103   : > { %1031 = vmatmul.mubr.msk.f32.gmra.mrb[6].mxu1 %vm479_vm2, %v463_v63 }
 0x104   : > { %1033 = vmatprep.mubr.msk.f32.mxu1 %vm479_vm2, %v464_v1  ;;  %1067 = vmatpush1.bf16.msra.mxu1 %v1058_v20 }
 0x107   : > { %1034 = vmatmul.mubr.msk.f32.gmra.mrb[8].mxu1 %vm479_vm2, %v465_v2 }
 0x108   : > { %789 = vmatprep.mubr.f32.mxu1 %v1117_v21 }
 0x1ce   : > { %v1026_v23 = vpop.f32.mrb[2].mxu1 }
 0x1cf   : > { %v576_v24 = vadd.f32 %v1026_v23, %v939_v22  ;;  %v570_v25 = vpop.f32.mrb[3].mxu1 }
 0x1d0   : > { %v571_v26 = vadd.f32 %v939_v22, %v570_v25 }
 0x1d1   : > { %v610_v27 = vand.u32 2147483647, %v576_v24 }
 0x1d2   : > { %v609_v28 = vand.u32 2147483647, %v571_v26  ;;  %v1029_v29 = vpop.f32.mrb[4].mxu1 }
 0x1d3   : > { %v580_v30 = vpop.f32.mrb[5].mxu1  ;;  %v618_v31 = vadd.f32 1.0, %v610_v27  ;;  %v586_v33 = vadd.f32 %v1029_v29, %v939_v22 }
 0x1d4   : > { %v617_v32 = vadd.f32 1.0, %v609_v28  ;;  %v581_v34 = vadd.f32 %v939_v22, %v580_v30 }
 0x1d5   : > { %v612_v38 = vand.u32 2147483647, %v586_v33 }
 0x1d6   : > { %1093 = vrcp.f32 %v617_v32  ;;  %v611_v35 = vand.u32 2147483647, %v581_v34  ;;  %v1032_v36 = vpop.f32.mrb[6].mxu1 }
 0x1d7   : > { %v590_v37 = vpop.f32.mrb[7].mxu1  ;;  %1095 = vrcp.f32 %v618_v31  ;;  %v620_v45 = vadd.f32 1.0, %v612_v38  ;;  %v596_v46 = vadd.f32 %v1032_v36, %v939_v22 }
 0x1d8   : > { %v619_v39 = vadd.f32 1.0, %v611_v35  ;;  %v591_v40 = vadd.f32 %v939_v22, %v590_v37 }
 0x1d9   : > { %v614_v52 = vand.u32 2147483647, %v596_v46 }
 0x1da   : > { %v1035_v41 = vpop.f32.mrb[8].mxu1  ;;  %v613_v42 = vand.u32 2147483647, %v591_v40  ;;  %1097 = vrcp.f32 %v619_v39 }
 0x1db   : > { %v606_v43 = vadd.f32 %v1035_v41, %v939_v22  ;;  %v600_v44 = vpop.f32.mrb[9].mxu1  ;;  %1099 = vrcp.f32 %v620_v45  ;;  %v622_v57 = vadd.f32 1.0, %v614_v52 }
 0x1dc   : > { %v601_v47 = vadd.f32 %v939_v22, %v600_v44  ;;  %v621_v50 = vadd.f32 1.0, %v613_v42 }
 0x1dd   : > { %v616_v48 = vand.u32 2147483647, %v606_v43 }
 0x1de   : > { %v615_v49 = vand.u32 2147483647, %v601_v47 }
 0x1df   : > { %v624_v53 = vadd.f32 1.0, %v616_v48 }
 0x1e0   : > { %v1094_v51 = vpop.eup %1093  ;;  %v623_v54 = vadd.f32 1.0, %v615_v49 }
 0x1e1   : > { %v633_v55 = vmul.f32 %v1094_v51, %v571_v26  ;;  %v1096_v56 = vpop.eup %1095 }
 0x1e2   : > { %1101 = vrcp.f32 %v623_v54  ;;  %v634_v58 = vmul.f32 %v1096_v56, %v576_v24 }
 0x1e3   : > { %1103 = vrcp.f32 %v621_v50  ;;  %948 = vmatmul.mubr.msk.f32.vlgmr.msra.gmra.mrb[6].mxu0 %vm479_vm2, %v633_v55 }
 0x1e4   : > { %1105 = vrcp.f32 %v624_v53  ;;  %759 = vmatprep.mubr.f32.mxu0 %v1117_v21  ;;  %v1098_v59 = vpop.eup %1097 }
 0x1e5   : > { %1107 = vrcp.f32 %v622_v57  ;;  %v635_v60 = vmul.f32 %v1098_v59, %v581_v34  ;;  %v1100_v61 = vpop.eup %1099 }
 0x1e6   : > { %v636_v0 = vmul.f32 %v1100_v61, %v586_v33 }
 0x1e7   : > { %949 = vmatmul.mubr.msk.f32.gmra.mrb[8].mxu0 %vm479_vm2, %v634_v58 }
 0x1e8   : > { %765 = vmatprep.mubr.f32.mxu0 %v1117_v21 }
 0x1eb   : > { %950 = vmatmul.mubr.msk.f32.gmra.mrb[10].mxu0 %vm479_vm2, %v635_v60 }
 0x1ec   : > { %v1102_v62 = vpop.eup %1101  ;;  %771 = vmatprep.mubr.f32.mxu0 %v1117_v21 }
 0x1ed   : > { %v1104_v63 = vpop.eup %1103  ;;  %v639_v1 = vmul.f32 %v1102_v62, %v601_v47 }
 0x1ee   : > { %v1106_v2 = vpop.eup %1105  ;;  %v637_v3 = vmul.f32 %v1104_v63, %v591_v40 }
 0x1ef   : > { %951 = vmatmul.mubr.msk.f32.gmra.mrb[12].mxu0 %vm479_vm2, %v636_v0  ;;  %954 = vmatmul.mubr.msk.f32.vlgmr.msra.gmra.mrb[10].mxu1 %vm479_vm2, %v639_v1  ;;  %v640_v4 = vmul.f32 %v1106_v2, %v606_v43  ;;  %v1108_v5 = vpop.eup %1107 }
 0x1f0   : > { %777 = vmatprep.mubr.f32.mxu0 %v1117_v21  ;;  %795 = vmatprep.mubr.f32.mxu1 %v1117_v21  ;;  %v638_v6 = vmul.f32 %v1108_v5, %v596_v46 }
 0x1f3   : > { %952 = vmatmul.mubr.msk.f32.gmra.mrb[14].mxu0 %vm479_vm2, %v637_v3  ;;  %955 = vmatmul.mubr.msk.f32.gmra.mrb[12].mxu1 %vm479_vm2, %v640_v4 }
 0x1f4   : > { %783 = vmatprep.mubr.f32.mxu0 %v1117_v21 }
 0x1f7   : > { %953 = vmatmul.mubr.msk.f32.gmra.mrb[16].mxu0 %vm479_vm2, %v638_v6 }
 0x2b6   : > { %v755_v14 = vpop.f32.mrb[6].mxu0 }
 0x2b7   : > { %v756_v15 = vadd.f32 %v755_v14, %v658_v12  ;;  %v757_v16 = vpop.f32.mrb[7].mxu0 }
 0x2b8   : > { %v758_v17 = vadd.f32 %v757_v16, %v662_v13 }
 0x2ba   : > { %v967_v19 = vpack.c.bf16 %v758_v17, %v756_v15  ;;  %v761_v20 = vpop.f32.mrb[8].mxu0 }
 0x2bb   : > { %v762_v21 = vadd.f32 %v761_v20, %v658_v12  ;;  %v763_v22 = vpop.f32.mrb[9].mxu0 }
 0x2bc   : > { %853 = vst.msk [vmem:[%s1277_s14] sm:$0xff] %vm1279_vm5, %v967_v19  ;;  %v764_v23 = vadd.f32 %v763_v22, %v662_v13 }
 0x2be   : > { %v968_v24 = vpack.c.bf16 %v764_v23, %v762_v21  ;;  %v767_v25 = vpop.f32.mrb[10].mxu0 }
 0x2bf   : > { %v768_v26 = vadd.f32 %v767_v25, %v658_v12  ;;  %v769_v27 = vpop.f32.mrb[11].mxu0 }
 0x2c0   : > { %854 = vst.msk [vmem:[%s1277_s14 + $0x8] sm:$0xff] %vm1279_vm5, %v968_v24  ;;  %v770_v28 = vadd.f32 %v769_v27, %v662_v13 }
 0x2c2   : > { %v969_v29 = vpack.c.bf16 %v770_v28, %v768_v26  ;;  %v773_v30 = vpop.f32.mrb[12].mxu0  ;;  %v791_v31 = vpop.f32.mrb[10].mxu1 }
 0x2c3   : > { %v774_v32 = vadd.f32 %v773_v30, %v658_v12  ;;  %v792_v33 = vadd.f32 %v791_v31, %v658_v12  ;;  %v775_v34 = vpop.f32.mrb[13].mxu0  ;;  %v793_v35 = vpop.f32.mrb[11].mxu1 }
 0x2c4   : > { %855 = vst.msk [vmem:[%s1277_s14 + $0x10] sm:$0xff] %vm1279_vm5, %v969_v29  ;;  %v776_v36 = vadd.f32 %v775_v34, %v662_v13  ;;  %v794_v37 = vadd.f32 %v793_v35, %v662_v13 }
 0x2c6   : > { %v970_v38 = vpack.c.bf16 %v776_v36, %v774_v32  ;;  %v973_v39 = vpack.c.bf16 %v794_v37, %v792_v33  ;;  %v779_v40 = vpop.f32.mrb[14].mxu0  ;;  %v797_v41 = vpop.f32.mrb[12].mxu1 }
 0x2c7   : > { %v780_v42 = vadd.f32 %v779_v40, %v658_v12  ;;  %v798_v43 = vadd.f32 %v797_v41, %v658_v12  ;;  %v781_v44 = vpop.f32.mrb[15].mxu0  ;;  %v799_v45 = vpop.f32.mrb[13].mxu1 }
 0x2c8   : > { %856 = vst.msk [vmem:[%s1277_s14 + $0x18] sm:$0xff] %vm1279_vm5, %v970_v38  ;;  %859 = vst.msk [vmem:[%s1277_s14 + $0x30] sm:$0xff] %vm1279_vm5, %v973_v39  ;;  %v782_v46 = vadd.f32 %v781_v44, %v662_v13  ;;  %v800_v47 = vadd.f32 %v799_v45, %v662_v13 }
 0x2ca   : > { %v971_v48 = vpack.c.bf16 %v782_v46, %v780_v42  ;;  %v974_v49 = vpack.c.bf16 %v800_v47, %v798_v43  ;;  %v785_v50 = vpop.f32.mrb[16].mxu0 }
 0x2cb   : > { %v786_v51 = vadd.f32 %v785_v50, %v658_v12  ;;  %v787_v52 = vpop.f32.mrb[17].mxu0 }
 0x2cc   : > { %857 = vst.msk [vmem:[%s1277_s14 + $0x20] sm:$0xff] %vm1279_vm5, %v971_v48  ;;  %860 = vst.msk [vmem:[%s1277_s14 + $0x38] sm:$0xff] %vm1279_vm5, %v974_v49  ;;  %v788_v53 = vadd.f32 %v787_v52, %v662_v13 }
 0x2ce   : > { %v972_v54 = vpack.c.bf16 %v788_v53, %v786_v51 }
 0x2d0   : > { %858 = vst.msk [vmem:[%s1277_s14 + $0x28] sm:$0xff] %vm1279_vm5, %v972_v54 }
 0x2d1 PF: > { %s17_s24 = sadd.s32 1, %s1115_s24  }
 0x2d2   : > { %p14_p4 = scmp.ge.s32.totalorder %s17_s24, 6  }
 0x2d4   :  { %16 = sbr.rel (!%p14_p4) target bundleno = 1 (0x1), region = 78 }

</bundles_post_ra>
